<compile_context>
chip_gen: v7x
topology: tpu7x:2x2x1
jax: 0.10.0
libtpu: 0.0.40
codegen_flags: <defaults>
</compile_context>

<pallas_src>
import functools

import jax
import jax.numpy as jnp
from jax.experimental import pallas as pl
from jax.experimental.pallas import tpu as pltpu


# ---------------------------------------------------------------------------
# Hardware detection (best effort; only steers perf heuristics)
# ---------------------------------------------------------------------------
def _tpu_generation():
    """Returns 5/6/7/... for TPU v5e/v6e/v7x etc., 0 if unknown / not TPU."""
    try:
        d = jax.devices()[0]
        if d.platform != "tpu":
            return 0
        kind = d.device_kind.lower().replace(" ", "")
        for g in (7, 6, 5, 4, 3, 2):
            if f"v{g}" in kind or f"tpu{g}" in kind:
                return g
    except Exception:
        pass
    return 0


# ---------------------------------------------------------------------------
# Kernel
# ---------------------------------------------------------------------------
def _mlp_kernel(x_ref, *refs, act_dtype):
    """Fused MLP: refs = (w0, b0, w1, b1, ..., out_ref)."""
    out_ref = refs[-1]
    wb = refs[:-1]
    n_layers = len(wb) // 2

    h = x_ref[...]                       # bf16 or f32, loaded as stored
    for l in range(n_layers):
        w_ref = wb[2 * l]
        b_ref = wb[2 * l + 1]
        # bf16 (or f32) matmul inputs, f32 accumulation on the MXU, f32 bias add.
        z = jnp.dot(h.astype(w_ref.dtype), w_ref[...],
                    preferred_element_type=jnp.float32) + b_ref[...]
        if l < n_layers - 1:
            # sigmoid(x) = 0.5 * (tanh(x/2) + 1): single EUP op, stable.
            # act_dtype = bf16 on v6e/v7x (bf16 EUP/VPU), f32 on v5e/older.
            za = z.astype(act_dtype)
            h = (0.5 * (jnp.tanh(0.5 * za) + 1.0)).astype(act_dtype)
        else:
            h = z
    out_ref[...] = h.astype(out_ref.dtype)


# ---------------------------------------------------------------------------
# Parameter packing (call once, reuse)
# ---------------------------------------------------------------------------
def _round_up(x, m):
    return ((x + m - 1) // m) * m


def _pad_to(a, shape):
    pads = [(0, s - d) for d, s in zip(a.shape, shape)]
    return jnp.pad(a, pads)


def pack_params(params, input_dim, *, use_bf16=True):
    """Fold the activation-free bottleneck and zero-pad to lane-dense shapes.

    params: 8 (W, b) pairs with W in [in, out] layout (i.e. torch W.T).
    Returns (layers, d_pad): 7 packed (W, b) pairs.  Do this once and reuse;
    it runs a handful of small pad/cast/matmul ops on the weights.
    """
    assert len(params) == 8
    ws = [jnp.asarray(w, jnp.float32) for (w, _) in params]
    bs = [jnp.asarray(b, jnp.float32).reshape(1, -1) for (_, b) in params]
    (w0, w1, w2, w3, w4, w5, w6, w7) = ws
    (b0, b1, b2, b3, b4, b5, b6, b7) = bs

    # (h@w3+b3)@w4+b4 == h@(w3@w4) + (b3@w4+b4): exact, removes two tiny MXU passes.
    w34 = w3 @ w4
    b34 = b3 @ w4 + b4

    d_pad = _round_up(input_dim, 128)

    layers = [
        (_pad_to(w0, (d_pad, 256)), b0),                        # in  -> 256
        (w1, b1),                                               # 256 -> 128
        (_pad_to(w2, (128, 128)), _pad_to(b2, (1, 128))),       # 128 -> 64(->128)
        (_pad_to(w34, (128, 128)), _pad_to(b34, (1, 128))),     # folded bottleneck
        (_pad_to(w5, (128, 128)), b5),                          # 64(->128) -> 128
        (w6, b6),                                               # 128 -> 256
        (_pad_to(w7, (256, d_pad)), _pad_to(b7, (1, d_pad))),   # 256 -> in
    ]
    # NOTE: the padded 128->128 layers only fill ~1/4 of a 256-deep MXU
    # (K=N=128); the mitigation is a larger batch tile (M), not more padding.
    if use_bf16:
        layers = [(w.astype(jnp.bfloat16), b) for (w, b) in layers]
    return layers, d_pad


# ---------------------------------------------------------------------------
# Tiling heuristics
# ---------------------------------------------------------------------------
def _choose_tile(batch, batch_tile, want_multi_step):
    """Batch tile: multiple of 8, prefer an exact divisor of the 8-aligned
    batch (no extra padded rows); >=2 grid steps on 2-TensorCore chips."""
    b8 = max(8, _round_up(batch, 8))
    cap = max(8, min(_round_up(batch_tile, 8), b8))

    tile = 8
    for t in range(cap, 7, -8):          # largest exact divisor <= cap
        if b8 % t == 0:
            tile = t
            break
    if tile * 2 < cap:
        # Exact divisor is much smaller than the cap: accept a *modest* amount
        # of batch padding in exchange for a big tile.
        padded = _round_up(b8, cap)
        if padded - b8 <= max(cap // 4, padded // 16):
            tile = cap
    if want_multi_step and b8 // tile < 2 and b8 >= 16:
        # v7x has 2 TensorCores; a single grid step leaves one idle.
        tile = min(tile, _round_up(pl.cdiv(b8, 2), 8))
    b_pad = _round_up(b8, tile)
    return tile, b_pad


# ---------------------------------------------------------------------------
# Forward pass
# ---------------------------------------------------------------------------
def autoencoder_forward_packed(x, layers, d_pad, *, batch_tile=512,
                               use_bf16=True, bf16_activations=None):
    """Forward pass given pre-packed layers (see pack_params).

    batch_tile: 512-1024 recommended (per-grid-step overhead ~0.35us dominates
    at small tiles); auto-shrunk if the VMEM footprint would be too large.
    """
    x = jnp.asarray(x)
    if x.dtype not in (jnp.float32, jnp.bfloat16):
        x = x.astype(jnp.float32)
    B, input_dim = x.shape
    assert d_pad >= input_dim and d_pad % 128 == 0

    gen = _tpu_generation()
    # bf16 sigmoid / carried activations only where VPU+EUP are bf16-capable.
    act_bf16 = use_bf16 and (bf16_activations if bf16_activations is not None
                             else gen >= 6)
    act_dtype = jnp.bfloat16 if act_bf16 else jnp.float32

    w_bytes = sum(int(w.size) * w.dtype.itemsize + int(b.size) * b.dtype.itemsize
                  for (w, b) in layers)

    # VMEM-aware cap on the batch tile (x/out blocks are double-buffered).
    x_itemsize = 2 if (use_bf16 and d_pad != input_dim) else x.dtype.itemsize
    if gen >= 7:
        vmem_budget = 40 << 20          # 64 MiB physical on v7x
    elif gen >= 5:
        vmem_budget = 80 << 20          # 128 MiB physical on v5e/v6e
    else:
        vmem_budget = 24 << 20
    per_row_bytes = 2 * d_pad * (x_itemsize + 4) + 4 * 256 * 4
    avail = max(vmem_budget - 2 * w_bytes, vmem_budget // 4)
    max_rows = max(8, (avail // per_row_bytes) // 8 * 8)
    batch_tile_eff = max(8, min(int(batch_tile), int(max_rows)))

    tile, b_pad = _choose_tile(B, batch_tile_eff, want_multi_step=(gen >= 7))

    # Kernel input: if no padding is needed, feed x straight through (kernel
    # casts per-tile); otherwise write the padded copy in the matmul input
    # dtype so the kernel's x read is lane-dense and half-width.
    if b_pad == B and d_pad == input_dim:
        x_in = x
    else:
        pad_dtype = jnp.bfloat16 if use_bf16 else jnp.float32
        x_in = (jnp.zeros((b_pad, d_pad), pad_dtype)
                .at[:B, :input_dim].set(x.astype(pad_dtype)))

    # v7x has only 64 MiB VMEM: single-buffer the grid-invariant weights when
    # they are large enough to matter (never triggers for small input_dim).
    single_buffer_w = (gen >= 7 and w_bytes > (8 << 20))

    def _const_spec(shape):
        if single_buffer_w:
            try:
                return pl.BlockSpec(shape, lambda i: (0, 0),
                                    pipeline_mode=pl.Buffered(1))
            except Exception:            # older pallas without pipeline_mode
                pass
        return pl.BlockSpec(shape, lambda i: (0, 0))

    flat_inputs = [x_in]
    in_specs = [pl.BlockSpec((tile, d_pad), lambda i: (i, 0))]
    for (w, b) in layers:
        flat_inputs += [w, b]
        in_specs += [_const_spec(w.shape), _const_spec(b.shape)]

    flops = 2 * b_pad * sum(int(w.shape[0]) * int(w.shape[1]) for w, _ in layers)
    transcendentals = b_pad * sum(int(w.shape[1]) for w, _ in layers[:-1])
    bytes_accessed = (int(x_in.size) * x_in.dtype.itemsize
                      + b_pad * d_pad * 4 + w_bytes)

    est_vmem = (2 * tile * d_pad * (x_in.dtype.itemsize + 4)
                + (1 if single_buffer_w else 2) * w_bytes
                + 4 * tile * 256 * 4)
    if gen >= 7:
        vmem_limit = min(56 << 20, max(32 << 20, est_vmem * 3 // 2))
    elif gen >= 5:
        vmem_limit = min(100 << 20, max(32 << 20, est_vmem * 3 // 2))
    else:
        vmem_limit = None                # compiler default

    out = pl.pallas_call(
        functools.partial(_mlp_kernel, act_dtype=act_dtype),
        out_shape=jax.ShapeDtypeStruct((b_pad, d_pad), jnp.float32),
        grid_spec=pltpu.PrefetchScalarGridSpec(
            num_scalar_prefetch=0,
            grid=(b_pad // tile,),
            in_specs=in_specs,
            out_specs=pl.BlockSpec((tile, d_pad), lambda i: (i, 0)),
        ),
        compiler_params=pltpu.CompilerParams(
            dimension_semantics=("parallel",),
            vmem_limit_bytes=vmem_limit,
        ),
        cost_estimate=pl.CostEstimate(
            flops=flops,
            transcendentals=transcendentals,
            bytes_accessed=bytes_accessed,
        ),
    )(*flat_inputs)

    if b_pad == B and d_pad == input_dim:
        return out
    return out[:B, :input_dim]


def autoencoder_forward(x, params, *, batch_tile=512, use_bf16=True,
                        bf16_activations=None):
    """Convenience wrapper: packs raw params on every call.  For repeated use,
    prefer make_autoencoder_forward (packs once + jits)."""
    layers, d_pad = pack_params(params, x.shape[-1], use_bf16=use_bf16)
    return autoencoder_forward_packed(
        x, layers, d_pad, batch_tile=batch_tile, use_bf16=use_bf16,
        bf16_activations=bf16_activations)


def make_autoencoder_forward(params, input_dim, *, batch_tile=512,
                             use_bf16=True, bf16_activations=None):
    """Pack the weights once and return a jitted forward(x) callable."""
    layers, d_pad = pack_params(params, input_dim, use_bf16=use_bf16)

    @jax.jit
    def forward(x):
        return autoencoder_forward_packed(
            x, layers, d_pad, batch_tile=batch_tile, use_bf16=use_bf16,
            bf16_activations=bf16_activations)

    return forward


# ---------------------------------------------------------------------------
# Parameter init + pure-JAX reference (mirrors the PyTorch module)
# ---------------------------------------------------------------------------
def init_params(key, input_dim, hidden_dim=2):
    """Weights stored as [in, out] (torch W.T); torch-style uniform init."""
    dims = [
        (input_dim, 256), (256, 128), (128, 64), (64, hidden_dim),   # encoder
        (hidden_dim, 64), (64, 128), (128, 256), (256, input_dim),   # decoder
    ]
    params = []
    for (din, dout) in dims:
        key, kw, kb = jax.random.split(key, 3)
        bound = 1.0 / jnp.sqrt(din)
        w = jax.random.uniform(kw, (din, dout), jnp.float32, -bound, bound)
        b = jax.random.uniform(kb, (1, dout), jnp.float32, -bound, bound)
        params.append((w, b))
    return params


def reference_forward(x, params):
    h = x
    for idx, (w, b) in enumerate(params):
        h = h @ w + b
        if idx not in (3, 7):   # no sigmoid at bottleneck output / final layer
            h = jax.nn.sigmoid(h)
    return h


# ---------------------------------------------------------------------------
# Smoke test
# ---------------------------------------------------------------------------
if __name__ == "__main__":
    key = jax.random.PRNGKey(0)
    input_dim = 32
    hidden_dim = 2
    batch = 8

    kx, kp, kx2 = jax.random.split(key, 3)
    x = jax.random.normal(kx, (batch, input_dim), jnp.float32)
    params = init_params(kp, input_dim, hidden_dim)
    ref = reference_forward(x, params)

    # 1) Recommended serving path: pack once + jit, bf16 matmuls.
    fwd = make_autoencoder_forward(params, input_dim)
    out_bf16 = jax.block_until_ready(fwd(x))
    assert out_bf16.shape == (batch, input_dim)
    assert jnp.allclose(out_bf16, ref, atol=5e-2, rtol=5e-2), "bf16 path mismatch"

    # 2) f32 path, tight tolerance (validates fold / padding exactness).
    out_f32 = jax.block_until_ready(
        autoencoder_forward(x, params, use_bf16=False))
    assert jnp.allclose(out_f32, ref, atol=1e-4, rtol=1e-4), "f32 path mismatch"

    # 3) Ragged batch (batch padding + possibly multi-step grid).
    x2 = jax.random.normal(kx2, (300, input_dim), jnp.float32)
    out2 = jax.block_until_ready(fwd(x2))
    ref2 = reference_forward(x2, params)
    assert out2.shape == (300, input_dim)
    assert jnp.allclose(out2, ref2, atol=5e-2, rtol=5e-2), "ragged batch mismatch"

    # TODO(synk): `momentum` and `jacobian` (vmap(jacrev)) helpers are not part
    # of forward(); use plain JAX (jax.vmap(jax.jacrev(forward))) for those.

    print("KERNEL_OK")
</pallas_src>

<mosaic_0001>
module attributes {stable_mosaic.version = 11 : i64} {
  func.func @_mlp_kernel(%arg0: i32, %arg1: memref<8x128xbf16, #tpu.memory_space<vmem>>, %arg2: memref<128x256xbf16, #tpu.memory_space<vmem>>, %arg3: memref<1x256xf32, #tpu.memory_space<vmem>>, %arg4: memref<256x128xbf16, #tpu.memory_space<vmem>>, %arg5: memref<1x128xf32, #tpu.memory_space<vmem>>, %arg6: memref<128x128xbf16, #tpu.memory_space<vmem>>, %arg7: memref<1x128xf32, #tpu.memory_space<vmem>>, %arg8: memref<128x128xbf16, #tpu.memory_space<vmem>>, %arg9: memref<1x128xf32, #tpu.memory_space<vmem>>, %arg10: memref<128x128xbf16, #tpu.memory_space<vmem>>, %arg11: memref<1x128xf32, #tpu.memory_space<vmem>>, %arg12: memref<128x256xbf16, #tpu.memory_space<vmem>>, %arg13: memref<1x256xf32, #tpu.memory_space<vmem>>, %arg14: memref<256x128xbf16, #tpu.memory_space<vmem>>, %arg15: memref<1x128xf32, #tpu.memory_space<vmem>>, %arg16: memref<8x128xf32, #tpu.memory_space<vmem>>) attributes {dimension_semantics = [#tpu.dimension_semantics<parallel>], iteration_bounds = array<i64: 1>, scalar_prefetch = 0 : i64, scratch_operands = 0 : i64, tpu.core_type = #tpu.core_type<tc>, window_params = [{transform_indices = @transform_0, window_bounds = array<i64: 8, 128>}, {pipeline_mode = #tpu.pipeline_mode<synchronous>, transform_indices = @transform_1, window_bounds = array<i64: 128, 256>}, {pipeline_mode = #tpu.pipeline_mode<synchronous>, transform_indices = @transform_2, window_bounds = array<i64: 1, 256>}, {pipeline_mode = #tpu.pipeline_mode<synchronous>, transform_indices = @transform_3, window_bounds = array<i64: 256, 128>}, {pipeline_mode = #tpu.pipeline_mode<synchronous>, transform_indices = @transform_4, window_bounds = array<i64: 1, 128>}, {pipeline_mode = #tpu.pipeline_mode<synchronous>, transform_indices = @transform_5, window_bounds = array<i64: 128, 128>}, {pipeline_mode = #tpu.pipeline_mode<synchronous>, transform_indices = @transform_6, window_bounds = array<i64: 1, 128>}, {pipeline_mode = #tpu.pipeline_mode<synchronous>, transform_indices = @transform_7, window_bounds = array<i64: 128, 128>}, {pipeline_mode = #tpu.pipeline_mode<synchronous>, transform_indices = @transform_8, window_bounds = array<i64: 1, 128>}, {pipeline_mode = #tpu.pipeline_mode<synchronous>, transform_indices = @transform_9, window_bounds = array<i64: 128, 128>}, {pipeline_mode = #tpu.pipeline_mode<synchronous>, transform_indices = @transform_10, window_bounds = array<i64: 1, 128>}, {pipeline_mode = #tpu.pipeline_mode<synchronous>, transform_indices = @transform_11, window_bounds = array<i64: 128, 256>}, {pipeline_mode = #tpu.pipeline_mode<synchronous>, transform_indices = @transform_12, window_bounds = array<i64: 1, 256>}, {pipeline_mode = #tpu.pipeline_mode<synchronous>, transform_indices = @transform_13, window_bounds = array<i64: 256, 128>}, {pipeline_mode = #tpu.pipeline_mode<synchronous>, transform_indices = @transform_14, window_bounds = array<i64: 1, 128>}, {transform_indices = @transform_15, window_bounds = array<i64: 8, 128>}]} {
    %c0 = arith.constant 0 : index
    %c0_0 = arith.constant 0 : index
    %0 = vector.load %arg1[%c0, %c0_0] : memref<8x128xbf16, #tpu.memory_space<vmem>>, vector<8x128xbf16>
    %c0_1 = arith.constant 0 : index
    %c0_2 = arith.constant 0 : index
    %1 = vector.load %arg2[%c0_1, %c0_2] : memref<128x256xbf16, #tpu.memory_space<vmem>>, vector<128x256xbf16>
    %cst = arith.constant dense<0.000000e+00> : vector<8x256xf32>
    %2 = tpu.matmul %0, %1, %cst {dimension_numbers = #tpu.dot_dimension_numbers<[1], [0], [0], [1], [0, 0, 1, 1], [], []>} : vector<8x128xbf16>, vector<128x256xbf16>, vector<8x256xf32> -> vector<8x256xf32>
    %c0_3 = arith.constant 0 : index
    %c0_4 = arith.constant 0 : index
    %3 = vector.load %arg3[%c0_3, %c0_4] : memref<1x256xf32, #tpu.memory_space<vmem>>, vector<1x256xf32>
    %4 = vector.broadcast %3 : vector<1x256xf32> to vector<8x256xf32>
    %5 = arith.addf %2, %4 : vector<8x256xf32>
    %cst_5 = arith.constant 5.000000e-01 : f32
    %6 = vector.broadcast %cst_5 : f32 to vector<8x256xf32>
    %7 = arith.mulf %6, %5 : vector<8x256xf32>
    %8 = math.tanh %7 : vector<8x256xf32>
    %cst_6 = arith.constant 1.000000e+00 : f32
    %9 = vector.broadcast %cst_6 : f32 to vector<8x256xf32>
    %10 = arith.addf %8, %9 : vector<8x256xf32>
    %cst_7 = arith.constant 5.000000e-01 : f32
    %11 = vector.broadcast %cst_7 : f32 to vector<8x256xf32>
    %12 = arith.mulf %11, %10 : vector<8x256xf32>
    %13 = arith.truncf %12 : vector<8x256xf32> to vector<8x256xbf16>
    %c0_8 = arith.constant 0 : index
    %c0_9 = arith.constant 0 : index
    %14 = vector.load %arg4[%c0_8, %c0_9] : memref<256x128xbf16, #tpu.memory_space<vmem>>, vector<256x128xbf16>
    %cst_10 = arith.constant dense<0.000000e+00> : vector<8x128xf32>
    %15 = tpu.matmul %13, %14, %cst_10 {dimension_numbers = #tpu.dot_dimension_numbers<[1], [0], [0], [1], [0, 0, 1, 1], [], []>} : vector<8x256xbf16>, vector<256x128xbf16>, vector<8x128xf32> -> vector<8x128xf32>
    %c0_11 = arith.constant 0 : index
    %c0_12 = arith.constant 0 : index
    %16 = vector.load %arg5[%c0_11, %c0_12] : memref<1x128xf32, #tpu.memory_space<vmem>>, vector<1x128xf32>
    %17 = vector.broadcast %16 : vector<1x128xf32> to vector<8x128xf32>
    %18 = arith.addf %15, %17 : vector<8x128xf32>
    %cst_13 = arith.constant 5.000000e-01 : f32
    %19 = vector.broadcast %cst_13 : f32 to vector<8x128xf32>
    %20 = arith.mulf %19, %18 : vector<8x128xf32>
    %21 = math.tanh %20 : vector<8x128xf32>
    %cst_14 = arith.constant 1.000000e+00 : f32
    %22 = vector.broadcast %cst_14 : f32 to vector<8x128xf32>
    %23 = arith.addf %21, %22 : vector<8x128xf32>
    %cst_15 = arith.constant 5.000000e-01 : f32
    %24 = vector.broadcast %cst_15 : f32 to vector<8x128xf32>
    %25 = arith.mulf %24, %23 : vector<8x128xf32>
    %26 = arith.truncf %25 : vector<8x128xf32> to vector<8x128xbf16>
    %c0_16 = arith.constant 0 : index
    %c0_17 = arith.constant 0 : index
    %27 = vector.load %arg6[%c0_16, %c0_17] : memref<128x128xbf16, #tpu.memory_space<vmem>>, vector<128x128xbf16>
    %cst_18 = arith.constant dense<0.000000e+00> : vector<8x128xf32>
    %28 = tpu.matmul %26, %27, %cst_18 {dimension_numbers = #tpu.dot_dimension_numbers<[1], [0], [0], [1], [0, 0, 1, 1], [], []>} : vector<8x128xbf16>, vector<128x128xbf16>, vector<8x128xf32> -> vector<8x128xf32>
    %c0_19 = arith.constant 0 : index
    %c0_20 = arith.constant 0 : index
    %29 = vector.load %arg7[%c0_19, %c0_20] : memref<1x128xf32, #tpu.memory_space<vmem>>, vector<1x128xf32>
    %30 = vector.broadcast %29 : vector<1x128xf32> to vector<8x128xf32>
    %31 = arith.addf %28, %30 : vector<8x128xf32>
    %cst_21 = arith.constant 5.000000e-01 : f32
    %32 = vector.broadcast %cst_21 : f32 to vector<8x128xf32>
    %33 = arith.mulf %32, %31 : vector<8x128xf32>
    %34 = math.tanh %33 : vector<8x128xf32>
    %cst_22 = arith.constant 1.000000e+00 : f32
    %35 = vector.broadcast %cst_22 : f32 to vector<8x128xf32>
    %36 = arith.addf %34, %35 : vector<8x128xf32>
    %cst_23 = arith.constant 5.000000e-01 : f32
    %37 = vector.broadcast %cst_23 : f32 to vector<8x128xf32>
    %38 = arith.mulf %37, %36 : vector<8x128xf32>
    %39 = arith.truncf %38 : vector<8x128xf32> to vector<8x128xbf16>
    %c0_24 = arith.constant 0 : index
    %c0_25 = arith.constant 0 : index
    %40 = vector.load %arg8[%c0_24, %c0_25] : memref<128x128xbf16, #tpu.memory_space<vmem>>, vector<128x128xbf16>
    %cst_26 = arith.constant dense<0.000000e+00> : vector<8x128xf32>
    %41 = tpu.matmul %39, %40, %cst_26 {dimension_numbers = #tpu.dot_dimension_numbers<[1], [0], [0], [1], [0, 0, 1, 1], [], []>} : vector<8x128xbf16>, vector<128x128xbf16>, vector<8x128xf32> -> vector<8x128xf32>
    %c0_27 = arith.constant 0 : index
    %c0_28 = arith.constant 0 : index
    %42 = vector.load %arg9[%c0_27, %c0_28] : memref<1x128xf32, #tpu.memory_space<vmem>>, vector<1x128xf32>
    %43 = vector.broadcast %42 : vector<1x128xf32> to vector<8x128xf32>
    %44 = arith.addf %41, %43 : vector<8x128xf32>
    %cst_29 = arith.constant 5.000000e-01 : f32
    %45 = vector.broadcast %cst_29 : f32 to vector<8x128xf32>
    %46 = arith.mulf %45, %44 : vector<8x128xf32>
    %47 = math.tanh %46 : vector<8x128xf32>
    %cst_30 = arith.constant 1.000000e+00 : f32
    %48 = vector.broadcast %cst_30 : f32 to vector<8x128xf32>
    %49 = arith.addf %47, %48 : vector<8x128xf32>
    %cst_31 = arith.constant 5.000000e-01 : f32
    %50 = vector.broadcast %cst_31 : f32 to vector<8x128xf32>
    %51 = arith.mulf %50, %49 : vector<8x128xf32>
    %52 = arith.truncf %51 : vector<8x128xf32> to vector<8x128xbf16>
    %c0_32 = arith.constant 0 : index
    %c0_33 = arith.constant 0 : index
    %53 = vector.load %arg10[%c0_32, %c0_33] : memref<128x128xbf16, #tpu.memory_space<vmem>>, vector<128x128xbf16>
    %cst_34 = arith.constant dense<0.000000e+00> : vector<8x128xf32>
    %54 = tpu.matmul %52, %53, %cst_34 {dimension_numbers = #tpu.dot_dimension_numbers<[1], [0], [0], [1], [0, 0, 1, 1], [], []>} : vector<8x128xbf16>, vector<128x128xbf16>, vector<8x128xf32> -> vector<8x128xf32>
    %c0_35 = arith.constant 0 : index
    %c0_36 = arith.constant 0 : index
    %55 = vector.load %arg11[%c0_35, %c0_36] : memref<1x128xf32, #tpu.memory_space<vmem>>, vector<1x128xf32>
    %56 = vector.broadcast %55 : vector<1x128xf32> to vector<8x128xf32>
    %57 = arith.addf %54, %56 : vector<8x128xf32>
    %cst_37 = arith.constant 5.000000e-01 : f32
    %58 = vector.broadcast %cst_37 : f32 to vector<8x128xf32>
    %59 = arith.mulf %58, %57 : vector<8x128xf32>
    %60 = math.tanh %59 : vector<8x128xf32>
    %cst_38 = arith.constant 1.000000e+00 : f32
    %61 = vector.broadcast %cst_38 : f32 to vector<8x128xf32>
    %62 = arith.addf %60, %61 : vector<8x128xf32>
    %cst_39 = arith.constant 5.000000e-01 : f32
    %63 = vector.broadcast %cst_39 : f32 to vector<8x128xf32>
    %64 = arith.mulf %63, %62 : vector<8x128xf32>
    %65 = arith.truncf %64 : vector<8x128xf32> to vector<8x128xbf16>
    %c0_40 = arith.constant 0 : index
    %c0_41 = arith.constant 0 : index
    %66 = vector.load %arg12[%c0_40, %c0_41] : memref<128x256xbf16, #tpu.memory_space<vmem>>, vector<128x256xbf16>
    %cst_42 = arith.constant dense<0.000000e+00> : vector<8x256xf32>
    %67 = tpu.matmul %65, %66, %cst_42 {dimension_numbers = #tpu.dot_dimension_numbers<[1], [0], [0], [1], [0, 0, 1, 1], [], []>} : vector<8x128xbf16>, vector<128x256xbf16>, vector<8x256xf32> -> vector<8x256xf32>
    %c0_43 = arith.constant 0 : index
    %c0_44 = arith.constant 0 : index
    %68 = vector.load %arg13[%c0_43, %c0_44] : memref<1x256xf32, #tpu.memory_space<vmem>>, vector<1x256xf32>
    %69 = vector.broadcast %68 : vector<1x256xf32> to vector<8x256xf32>
    %70 = arith.addf %67, %69 : vector<8x256xf32>
    %cst_45 = arith.constant 5.000000e-01 : f32
    %71 = vector.broadcast %cst_45 : f32 to vector<8x256xf32>
    %72 = arith.mulf %71, %70 : vector<8x256xf32>
    %73 = math.tanh %72 : vector<8x256xf32>
    %cst_46 = arith.constant 1.000000e+00 : f32
    %74 = vector.broadcast %cst_46 : f32 to vector<8x256xf32>
    %75 = arith.addf %73, %74 : vector<8x256xf32>
    %cst_47 = arith.constant 5.000000e-01 : f32
    %76 = vector.broadcast %cst_47 : f32 to vector<8x256xf32>
    %77 = arith.mulf %76, %75 : vector<8x256xf32>
    %78 = arith.truncf %77 : vector<8x256xf32> to vector<8x256xbf16>
    %c0_48 = arith.constant 0 : index
    %c0_49 = arith.constant 0 : index
    %79 = vector.load %arg14[%c0_48, %c0_49] : memref<256x128xbf16, #tpu.memory_space<vmem>>, vector<256x128xbf16>
    %cst_50 = arith.constant dense<0.000000e+00> : vector<8x128xf32>
    %80 = tpu.matmul %78, %79, %cst_50 {dimension_numbers = #tpu.dot_dimension_numbers<[1], [0], [0], [1], [0, 0, 1, 1], [], []>} : vector<8x256xbf16>, vector<256x128xbf16>, vector<8x128xf32> -> vector<8x128xf32>
    %c0_51 = arith.constant 0 : index
    %c0_52 = arith.constant 0 : index
    %81 = vector.load %arg15[%c0_51, %c0_52] : memref<1x128xf32, #tpu.memory_space<vmem>>, vector<1x128xf32>
    %82 = vector.broadcast %81 : vector<1x128xf32> to vector<8x128xf32>
    %83 = arith.addf %80, %82 : vector<8x128xf32>
    %c0_53 = arith.constant 0 : index
    %c0_54 = arith.constant 0 : index
    %84 = vector.load %arg16[%c0_53, %c0_54] : memref<8x128xf32, #tpu.memory_space<vmem>>, vector<8x128xf32>
    tpu.vector_store %arg16[%c0_53, %c0_54], %83 {strides = array<i32>} : memref<8x128xf32, #tpu.memory_space<vmem>>, vector<8x128xf32>,
    return
  }
  func.func @transform_0(%arg0: i32) -> (i32, i32) {
    %c0_i32 = arith.constant 0 : i32
    %c0_i32_0 = arith.constant 0 : i32
    return %arg0, %c0_i32 : i32, i32
  }
  func.func @transform_1(%arg0: i32) -> (i32, i32) {
    %c0_i32 = arith.constant 0 : i32
    %c0_i32_0 = arith.constant 0 : i32
    %c0_i32_1 = arith.constant 0 : i32
    return %c0_i32, %c0_i32_0 : i32, i32
  }
  func.func @transform_2(%arg0: i32) -> (i32, i32) {
    %c0_i32 = arith.constant 0 : i32
    %c0_i32_0 = arith.constant 0 : i32
    %c0_i32_1 = arith.constant 0 : i32
    return %c0_i32, %c0_i32_0 : i32, i32
  }
  func.func @transform_3(%arg0: i32) -> (i32, i32) {
    %c0_i32 = arith.constant 0 : i32
    %c0_i32_0 = arith.constant 0 : i32
    %c0_i32_1 = arith.constant 0 : i32
    return %c0_i32, %c0_i32_0 : i32, i32
  }
  func.func @transform_4(%arg0: i32) -> (i32, i32) {
    %c0_i32 = arith.constant 0 : i32
    %c0_i32_0 = arith.constant 0 : i32
    %c0_i32_1 = arith.constant 0 : i32
    return %c0_i32, %c0_i32_0 : i32, i32
  }
  func.func @transform_5(%arg0: i32) -> (i32, i32) {
    %c0_i32 = arith.constant 0 : i32
    %c0_i32_0 = arith.constant 0 : i32
    %c0_i32_1 = arith.constant 0 : i32
    return %c0_i32, %c0_i32_0 : i32, i32
  }
  func.func @transform_6(%arg0: i32) -> (i32, i32) {
    %c0_i32 = arith.constant 0 : i32
    %c0_i32_0 = arith.constant 0 : i32
    %c0_i32_1 = arith.constant 0 : i32
    return %c0_i32, %c0_i32_0 : i32, i32
  }
  func.func @transform_7(%arg0: i32) -> (i32, i32) {
    %c0_i32 = arith.constant 0 : i32
    %c0_i32_0 = arith.constant 0 : i32
    %c0_i32_1 = arith.constant 0 : i32
    return %c0_i32, %c0_i32_0 : i32, i32
  }
  func.func @transform_8(%arg0: i32) -> (i32, i32) {
    %c0_i32 = arith.constant 0 : i32
    %c0_i32_0 = arith.constant 0 : i32
    %c0_i32_1 = arith.constant 0 : i32
    return %c0_i32, %c0_i32_0 : i32, i32
  }
  func.func @transform_9(%arg0: i32) -> (i32, i32) {
    %c0_i32 = arith.constant 0 : i32
    %c0_i32_0 = arith.constant 0 : i32
    %c0_i32_1 = arith.constant 0 : i32
    return %c0_i32, %c0_i32_0 : i32, i32
  }
  func.func @transform_10(%arg0: i32) -> (i32, i32) {
    %c0_i32 = arith.constant 0 : i32
    %c0_i32_0 = arith.constant 0 : i32
    %c0_i32_1 = arith.constant 0 : i32
    return %c0_i32, %c0_i32_0 : i32, i32
  }
  func.func @transform_11(%arg0: i32) -> (i32, i32) {
    %c0_i32 = arith.constant 0 : i32
    %c0_i32_0 = arith.constant 0 : i32
    %c0_i32_1 = arith.constant 0 : i32
    return %c0_i32, %c0_i32_0 : i32, i32
  }
  func.func @transform_12(%arg0: i32) -> (i32, i32) {
    %c0_i32 = arith.constant 0 : i32
    %c0_i32_0 = arith.constant 0 : i32
    %c0_i32_1 = arith.constant 0 : i32
    return %c0_i32, %c0_i32_0 : i32, i32
  }
  func.func @transform_13(%arg0: i32) -> (i32, i32) {
    %c0_i32 = arith.constant 0 : i32
    %c0_i32_0 = arith.constant 0 : i32
    %c0_i32_1 = arith.constant 0 : i32
    return %c0_i32, %c0_i32_0 : i32, i32
  }
  func.func @transform_14(%arg0: i32) -> (i32, i32) {
    %c0_i32 = arith.constant 0 : i32
    %c0_i32_0 = arith.constant 0 : i32
    %c0_i32_1 = arith.constant 0 : i32
    return %c0_i32, %c0_i32_0 : i32, i32
  }
  func.func @transform_15(%arg0: i32) -> (i32, i32) {
    %c0_i32 = arith.constant 0 : i32
    %c0_i32_0 = arith.constant 0 : i32
    return %arg0, %c0_i32 : i32, i32
  }
}

</mosaic_0001>

<bundles_post_ra>
// kernel: forward.1
= control target key start
LH: loop header
LB: loop body
LE: loop exit
PB: predicated region body
PF: predicated region fallthrough
CT: control target
= control target key end

     0   :  { %20 = vsyncpa [#allocation3], 0  ;;  %s2121_s0 = inlined_call_operand.vmem [shape: bf16[8,128], index: 0, kind: input, shape index: {}]   ;;  %s2122_s1 = inlined_call_operand.vmem [shape: bf16[128,256], index: 1, kind: input, shape index: {}]   ;;  %s2123_s2 = inlined_call_operand.hbm [shape: f32[1,256], index: 2, kind: input, shape index: {}]   ;;  %s2124_s3 = inlined_call_operand.vmem [shape: bf16[256,128], index: 3, kind: input, shape index: {}]   ;;  %s2125_s4 = inlined_call_operand.hbm [shape: f32[1,128], index: 4, kind: input, shape index: {}]   ;;  %s2126_s5 = inlined_call_operand.vmem [shape: bf16[128,128], index: 5, kind: input, shape index: {}]   ;;  %s2127_s6 = inlined_call_operand.hbm [shape: f32[1,128], index: 6, kind: input, shape index: {}]   ;;  %s2128_s7 = inlined_call_operand.vmem [shape: bf16[128,128], index: 7, kind: input, shape index: {}]   ;;  %s2129_s8 = inlined_call_operand.hbm [shape: f32[1,128], index: 8, kind: input, shape index: {}]   ;;  %s2130_s9 = inlined_call_operand.vmem [shape: bf16[128,128], index: 9, kind: input, shape index: {}]   ;;  %s2131_s10 = inlined_call_operand.hbm [shape: f32[1,128], index: 10, kind: input, shape index: {}]   ;;  %s2132_s11 = inlined_call_operand.vmem [shape: bf16[128,256], index: 11, kind: input, shape index: {}]   ;;  %s2133_s12 = inlined_call_operand.vmem [shape: f32[1,256], index: 12, kind: input, shape index: {}]   ;;  %s2134_s13 = inlined_call_operand.vmem [shape: bf16[256,128], index: 13, kind: input, shape index: {}]   ;;  %s2135_s14 = inlined_call_operand.vmem [shape: f32[1,128], index: 14, kind: input, shape index: {}]   ;;  %s2136_s15 = inlined_call_operand.hbm [shape: f32[8,128], index: 15, kind: output, shape index: {}]  }
   0x1   :  { %21 = vsyncpa [#allocation6], 0 }
   0x2   :  { %22 = vsyncpa [#allocation9], 0 }
   0x3   :  { %23 = vsyncpa [#allocation4], 0  ;;  %s1643_s18 = smov [#allocation5]   ;;  %s1644_s20 = smov [#allocation8]  }
   0x4   :  { %s46_s19 = sshll.u32 %s1643_s18, 4  ;;  %s70_s21 = sshll.u32 %s1644_s20, 4  ;;  %s47_s19 = int_to_ptr.vmem [resolvable:$true] %s46_s19  ;;  %s71_s21 = int_to_ptr.vmem [resolvable:$true] %s70_s21 }
   0x5   :  { %s1503_s24 = scalar_lea.hbm %s2125_s4, 16 }
   0x6   :  { %p1504_p0 = scmp.ne.s32.totalorder %s2125_s4, %s1503_s24  ;;  %p1507_p1 = scmp.lt.u32.totalorder %s1503_s24, %s2125_s4 }
   0x8   :  { %p1509_p2 = pnand %p1507_p1, %p1504_p0 }
   0xa   :  { %1512 = shalt.err (!%p1509_p2)
}
   0xb   :  { %s1513_s29 = scalar_lea.vmem %s47_s19, 16  ;;  %s1517_s30 = scalar_lea.vmem %s47_s19, 32 }
   0xc   :  { %p1514_p3 = scmp.ne.s32.totalorder %s47_s19, %s1513_s29  ;;  %p1518_p4 = scmp.lt.s32.totalorder %s47_s19, %s47_s19 }
   0xd   :  { %p1519_p5 = scmp.lt.s32.totalorder %s1517_s30, %s1513_s29 }
   0xf   :  { %p1520_p6 = por %p1519_p5, %p1518_p4 }
  0x11   :  { %p1521_p7 = pnand %p1520_p6, %p1514_p3 }
  0x13   :  { %1524 = shalt.err (!%p1521_p7)
}
  0x14   :  { %49 = dma.hbm_to_vmem [thread:$0]  %s2125_s4, 16, %s47_s19, [#allocation6]  }
  0x15   :  { %s1525_s22 = scalar_lea.hbm %s2129_s8, 16 }
  0x16   :  { %p1526_p8 = scmp.ne.s32.totalorder %s2129_s8, %s1525_s22  ;;  %p1529_p9 = scmp.lt.u32.totalorder %s1525_s22, %s2129_s8 }
  0x18   :  { %p1531_p10 = pnand %p1529_p9, %p1526_p8 }
  0x1a   :  { %1534 = shalt.err (!%p1531_p10)
}
  0x1b   :  { %s1535_s27 = scalar_lea.vmem %s71_s21, 16  ;;  %s1539_s28 = scalar_lea.vmem %s71_s21, 32 }
  0x1c   :  { %p1536_p11 = scmp.ne.s32.totalorder %s71_s21, %s1535_s27  ;;  %p1540_p12 = scmp.lt.s32.totalorder %s71_s21, %s71_s21 }
  0x1d   :  { %p1541_p13 = scmp.lt.s32.totalorder %s1539_s28, %s1535_s27 }
  0x1f   :  { %p1542_p0 = por %p1541_p13, %p1540_p12 }
  0x21   :  { %p1543_p1 = pnand %p1542_p0, %p1536_p11 }
  0x23   :  { %1546 = shalt.err (!%p1543_p1)
}
  0x24   :  { %73 = dma.hbm_to_vmem [thread:$0]  %s2129_s8, 16, %s71_s21, [#allocation9]  }
  0x25   :  { %s1645_s29 = smov [#allocation2]   ;;  %s1646_s16 = smov [#allocation7]  }
  0x26   :  { %s34_s30 = sshll.u32 %s1645_s29, 4  ;;  %s58_s17 = sshll.u32 %s1646_s16, 4  ;;  %s35_s30 = int_to_ptr.vmem [resolvable:$true] %s34_s30  ;;  %s59_s17 = int_to_ptr.vmem [resolvable:$true] %s58_s17 }
  0x27   :  { %s1547_s22 = scalar_lea.hbm %s2123_s2, 32 }
  0x28   :  { %p1548_p2 = scmp.ne.s32.totalorder %s2123_s2, %s1547_s22  ;;  %p1551_p3 = scmp.lt.u32.totalorder %s1547_s22, %s2123_s2 }
  0x2a   :  { %p1553_p4 = pnand %p1551_p3, %p1548_p2 }
  0x2c   :  { %1556 = shalt.err (!%p1553_p4)
}
  0x2d   :  { %s1557_s8 = scalar_lea.vmem %s35_s30, 32  ;;  %p1562_p6 = scmp.lt.s32.totalorder %s35_s30, %s35_s30 }
  0x2e   :  { %p1558_p5 = scmp.ne.s32.totalorder %s35_s30, %s1557_s8  ;;  %p1563_p7 = scmp.lt.s32.totalorder %s1557_s8, %s1557_s8 }
  0x30   :  { %p1564_p8 = por %p1563_p7, %p1562_p6 }
  0x32   :  { %p1565_p9 = pnand %p1564_p8, %p1558_p5 }
  0x34   :  { %1568 = shalt.err (!%p1565_p9)
}
  0x35   :  { %37 = dma.hbm_to_vmem [thread:$0]  %s2123_s2, 32, %s35_s30, [#allocation3]  }
  0x36   :  { %s1569_s19 = scalar_lea.hbm %s2127_s6, 16 }
  0x37   :  { %p1570_p10 = scmp.ne.s32.totalorder %s2127_s6, %s1569_s19  ;;  %p1573_p11 = scmp.lt.u32.totalorder %s1569_s19, %s2127_s6 }
  0x39   :  { %p1575_p12 = pnand %p1573_p11, %p1570_p10 }
  0x3b   :  { %1578 = shalt.err (!%p1575_p12)
}
  0x3c   :  { %s1579_s22 = scalar_lea.vmem %s59_s17, 16  ;;  %s1583_s23 = scalar_lea.vmem %s59_s17, 32 }
  0x3d   :  { %p1580_p13 = scmp.ne.s32.totalorder %s59_s17, %s1579_s22  ;;  %p1584_p0 = scmp.lt.s32.totalorder %s59_s17, %s59_s17 }
  0x3e   :  { %p1585_p1 = scmp.lt.s32.totalorder %s1583_s23, %s1579_s22 }
  0x40   :  { %p1586_p2 = por %p1585_p1, %p1584_p0 }
  0x42   :  { %p1587_p3 = pnand %p1586_p2, %p1580_p13 }
  0x44   :  { %1590 = shalt.err (!%p1587_p3)
}
  0x45   :  { %61 = dma.hbm_to_vmem [thread:$0]  %s2127_s6, 16, %s59_s17, [#allocation6]  }
  0x46   :  { %s1647_s24 = smov [#allocation10]   ;;  %s1591_s21 = scalar_lea.hbm %s2131_s10, 16 }
  0x47   :  { %s82_s25 = sshll.u32 %s1647_s24, 4  ;;  %p1592_p4 = scmp.ne.s32.totalorder %s2131_s10, %s1591_s21  ;;  %s83_s25 = int_to_ptr.vmem [resolvable:$true] %s82_s25 }
  0x48   :  { %p1595_p5 = scmp.lt.u32.totalorder %s1591_s21, %s2131_s10 }
  0x4a   :  { %p1597_p6 = pnand %p1595_p5, %p1592_p4 }
  0x4c   :  { %1600 = shalt.err (!%p1597_p6)
}
  0x4d   :  { %s1601_s29 = scalar_lea.vmem %s83_s25, 16  ;;  %s1605_s6 = scalar_lea.vmem %s83_s25, 32 }
  0x4e   :  { %p1602_p7 = scmp.ne.s32.totalorder %s83_s25, %s1601_s29  ;;  %p1606_p8 = scmp.lt.s32.totalorder %s83_s25, %s83_s25 }
  0x4f   :  { %p1607_p9 = scmp.lt.s32.totalorder %s1605_s6, %s1601_s29 }
  0x51   :  { %p1608_p10 = por %p1607_p9, %p1606_p8 }
  0x53   :  { %p1609_p11 = pnand %p1608_p10, %p1602_p7 }
  0x55   :  { %1612 = shalt.err (!%p1609_p11)
}
  0x56   :  { %85 = dma.hbm_to_vmem [thread:$0]  %s2131_s10, 16, %s83_s25, [#allocation9]  }
  0x57   :  { %1635 = dma.done.wait [#allocation3], 32  }
  0x58   :  { %1636 = vsyncadd [#allocation3], 4294967264 }
  0x59   :  { %1637 = dma.done.wait [#allocation6], 32  }
  0x5a   :  { %1638 = vsyncadd [#allocation6], 4294967264 }
  0x5b   :  { %1639 = dma.done.wait [#allocation9], 32  }
  0x5c   :  { %1640 = vsyncadd [#allocation9], 4294967264  ;;  %v1648_v0 = vmov 0   ;;  %v1383_v1 = vld [vmem:[%s2122_s1 + $0x4] ss:$8 sps:$4 sm:$0xff]   ;;  %v1411_v22 = vld [vmem:[%s2124_s3 + $0x50] sm:$0xff]   ;;  %v129_v37 = vlaneseq }
  0x5d   :  { %251 = vmatprep.mubr.bf16.mxu0 %v1648_v0  ;;  %v1385_v2 = vld [vmem:[%s2122_s1] ss:$8 sps:$4 sm:$0xff]   ;;  %219 = vmatprep.subr.bf16.mxu0 %v1383_v1  ;;  %v1386_v3 = vld [vmem:[%s2122_s1 + $0x14] ss:$8 sps:$4 sm:$0xff]   ;;  %v1388_v4 = vld [vmem:[%s2122_s1 + $0x10] ss:$8 sps:$4 sm:$0xff]  }
  0x5e   :  { %220 = vmatpush1.bf16.msra.mxu0 %v1385_v2  ;;  %v1389_v5 = vld [vmem:[%s2122_s1 + $0x24] ss:$8 sps:$4 sm:$0xff]   ;;  %v1391_v6 = vld [vmem:[%s2122_s1 + $0x20] ss:$8 sps:$4 sm:$0xff]   ;;  %v1392_v7 = vld [vmem:[%s2122_s1 + $0x34] ss:$8 sps:$4 sm:$0xff]  }
  0x5f   :  { %221 = vmatprep.subr.bf16.mxu0 %v1386_v3  ;;  %v1394_v8 = vld [vmem:[%s2122_s1 + $0x30] ss:$8 sps:$4 sm:$0xff]   ;;  %v1395_v9 = vld [vmem:[%s2122_s1 + $0x44] ss:$8 sps:$4 sm:$0xff]   ;;  %v1397_v12 = vld [vmem:[%s2122_s1 + $0x40] ss:$8 sps:$4 sm:$0xff]  }
  0x60   :  { %v1407_v10 = vld [vmem:[%s2124_s3 + $0x40] sm:$0xff]   ;;  %v1409_v13 = vld [vmem:[%s2124_s3 + $0x48] sm:$0xff]   ;;  %v1398_v15 = vld [vmem:[%s2122_s1 + $0x54] ss:$8 sps:$4 sm:$0xff]   ;;  %v1649_v35 = vmov 0.0   ;;  %v1902_v38 = vshrl.u32 %v129_v37, 7 }
  0x61   :  { %v1408_v11 = vld [vmem:[%s2124_s3] sm:$0xff]   ;;  %1243 = vmatprep.subr.bf16.mxu1 %v1407_v10  ;;  %v1410_v14 = vld [vmem:[%s2124_s3 + $0x8] sm:$0xff]   ;;  %v1400_v16 = vld [vmem:[%s2122_s1 + $0x50] ss:$8 sps:$4 sm:$0xff]   ;;  %vm1650_vm0 = vmmov 0   ;;  %s1651_s27 = smov [#allocation11]  }
  0x62   :  { %222 = vmatpush1.bf16.msra.mxu0 %v1388_v4  ;;  %1244 = vmatpush3.bf16.msra.mxu1 %v1408_v11  ;;  %v1401_v17 = vld [vmem:[%s2122_s1 + $0x64] ss:$8 sps:$4 sm:$0xff]   ;;  %v1403_v18 = vld [vmem:[%s2122_s1 + $0x60] ss:$8 sps:$4 sm:$0xff]   ;;  %v1404_v19 = vld [vmem:[%s2122_s1 + $0x74] ss:$8 sps:$4 sm:$0xff]  }
  0x63   :  { %223 = vmatprep.subr.bf16.mxu0 %v1389_v5  ;;  %1245 = vmatprep.subr.bf16.mxu1 %v1409_v13  ;;  %v1406_v20 = vld [vmem:[%s2122_s1 + $0x70] ss:$8 sps:$4 sm:$0xff]   ;;  %v110_v21 = vld [vmem:[%s2121_s0] sm:$0xf]  ;;  %v1417_v28 = vld [vmem:[%s2124_s3 + $0x68] sm:$0xff]   ;;  %v131_v39 = vsub.s32 0, %v1902_v38 }
  0x64   :  { %v1412_v23 = vld [vmem:[%s2124_s3 + $0x10] sm:$0xff]   ;;  %v1413_v24 = vld [vmem:[%s2124_s3 + $0x58] sm:$0xff]   ;;  %v1415_v26 = vld [vmem:[%s2124_s3 + $0x60] sm:$0xff]   ;;  %v135_v41 = vsub.s32 1, %v1902_v38 }
  0x65   :  { %v1414_v25 = vld [vmem:[%s2124_s3 + $0x18] sm:$0xff]   ;;  %v1416_v27 = vld [vmem:[%s2124_s3 + $0x20] sm:$0xff]   ;;  %v1418_v29 = vld [vmem:[%s2124_s3 + $0x28] sm:$0xff]  }
  0x66   :  { %224 = vmatpush1.bf16.msra.mxu0 %v1391_v6  ;;  %1246 = vmatpush3.bf16.msra.mxu1 %v1410_v14  ;;  %v1419_v30 = vld [vmem:[%s2124_s3 + $0x70] sm:$0xff]   ;;  %v1421_v32 = vld [vmem:[%s2124_s3 + $0x78] sm:$0xff]   ;;  %v1423_v34 = vld [vmem:[%s2126_s5] sm:$0xff]  }
  0x67   :  { %225 = vmatprep.subr.bf16.mxu0 %v1392_v7  ;;  %1247 = vmatprep.subr.bf16.mxu1 %v1411_v22  ;;  %v1420_v31 = vld [vmem:[%s2124_s3 + $0x30] sm:$0xff]   ;;  %v1422_v33 = vld [vmem:[%s2124_s3 + $0x38] sm:$0xff]   ;;  %v1424_v36 = vld [vmem:[%s2126_s5 + $0x8] sm:$0xff]  }
  0x68   :  { %v127_v40 = vld [vmem:[#allocation2] sm:$0x3]  ;;  %v1425_v60 = vld [vmem:[%s2126_s5 + $0x10] sm:$0xff]   ;;  %v1426_v61 = vld [vmem:[%s2126_s5 + $0x18] sm:$0xff]  }
  0x69   :  { %v132_v42 = vrot.slane %v127_v40, %v131_v39  ;;  %v136_v43 = vrot.slane %v127_v40, %v135_v41  ;;  %v1427_v62 = vld [vmem:[%s2126_s5 + $0x20] sm:$0xff]   ;;  %v1428_v63 = vld [vmem:[%s2126_s5 + $0x28] sm:$0xff]   ;;  %v1429_v1 = vld [vmem:[%s2126_s5 + $0x30] sm:$0xff]  }
  0x6a   :  { %226 = vmatpush1.bf16.msra.mxu0 %v1394_v8  ;;  %1248 = vmatpush3.bf16.msra.mxu1 %v1412_v23  ;;  %v1430_v2 = vld [vmem:[%s2126_s5 + $0x38] sm:$0xff]   ;;  %v1431_v3 = vld [vmem:[%s2128_s7] sm:$0xff]   ;;  %v1432_v4 = vld [vmem:[%s2128_s7 + $0x8] sm:$0xff]  }
  0x6b   :  { %227 = vmatprep.subr.bf16.mxu0 %v1395_v9  ;;  %1249 = vmatprep.subr.bf16.mxu1 %v1413_v24  ;;  %v1433_v5 = vld [vmem:[%s2128_s7 + $0x10] sm:$0xff]   ;;  %v1166_v7 = vld [vmem:[#allocation5] ss:$0 sm:$0xff]  ;;  %v1438_v22 = vld [vmem:[%s2128_s7 + $0x38] sm:$0xff]  }
  0x6c   :  { %v1439_v23 = vld [vmem:[%s2130_s9] sm:$0xff]   ;;  %v1440_v24 = vld [vmem:[%s2130_s9 + $0x8] sm:$0xff]   ;;  %v1442_v40 = vld [vmem:[%s2130_s9 + $0x18] sm:$0xff]  }
  0x6e   :  { %228 = vmatpush1.bf16.msra.mxu0 %v1397_v12  ;;  %1250 = vmatpush3.bf16.msra.mxu1 %v1414_v25  ;;  %v1441_v25 = vld [vmem:[%s2130_s9 + $0x10] sm:$0xff]  }
  0x6f   :  { %229 = vmatprep.subr.bf16.mxu0 %v1398_v15  ;;  %1251 = vmatprep.subr.bf16.mxu1 %v1415_v26  ;;  %v1183_v26 = vld [vmem:[#allocation7] ss:$0 sm:$0xff] }
  0x72   :  { %230 = vmatpush1.bf16.msra.mxu0 %v1400_v16  ;;  %1252 = vmatpush3.bf16.msra.mxu1 %v1416_v27 }
  0x73   :  { %231 = vmatprep.subr.bf16.mxu0 %v1401_v17  ;;  %1253 = vmatprep.subr.bf16.mxu1 %v1417_v28 }
  0x76   :  { %232 = vmatpush1.bf16.msra.mxu0 %v1403_v18  ;;  %1254 = vmatpush3.bf16.msra.mxu1 %v1418_v29  ;;  %v1434_v18 = vld [vmem:[%s2128_s7 + $0x18] sm:$0xff]  }
  0x77   :  { %233 = vmatprep.subr.bf16.mxu0 %v1404_v19  ;;  %1255 = vmatprep.subr.bf16.mxu1 %v1419_v30  ;;  %v1435_v19 = vld [vmem:[%s2128_s7 + $0x20] sm:$0xff]  }
  0x7a   :  { %234 = vmatpush1.bf16.msra.mxu0 %v1406_v20  ;;  %1256 = vmatpush3.bf16.msra.mxu1 %v1420_v31  ;;  %v1436_v20 = vld [vmem:[%s2128_s7 + $0x28] sm:$0xff]  }
  0x7b   :  { %1257 = vmatprep.subr.bf16.mxu1 %v1421_v32  ;;  %1314 = vmatprep.subr.bf16.mxu0 %v1649_v35 }
  0x7d   :  { %252 = vmatmul.mubr.bf16.vlgmr.msra.gmra.mrb[0].mxu0 %v110_v21  ;;  %v1437_v21 = vld [vmem:[%s2128_s7 + $0x30] sm:$0xff]  }
  0x7e   :  { %1258 = vmatpush3.bf16.msra.mxu1 %v1422_v33  ;;  %1315 = vmatpush3.bf16.msra.mxu0 %v1423_v34 }
  0x7f   :  { %1334 = vmatprep.subr.bf16.mxu1 %v1649_v35  ;;  %1316 = vmatprep.subr.bf16.mxu0 %v1649_v35 }
  0x80   :  { %1330 = vmatprep.mubr.msk.bf16.mxu0 %vm1650_vm0, %v1649_v35 }
  0x82   :  { %1317 = vmatpush3.bf16.msra.mxu0 %v1424_v36 }
  0x83   :  { %1318 = vmatprep.subr.bf16.mxu0 %v1649_v35 }
  0x86   :  { %1319 = vmatpush3.bf16.msra.mxu0 %v1425_v60 }
  0x87   :  { %1320 = vmatprep.subr.bf16.mxu0 %v1649_v35 }
  0x8a   :  { %1321 = vmatpush3.bf16.msra.mxu0 %v1426_v61  ;;  %v1458_v61 = vld [vmem:[%s2132_s11 + $0x34] ss:$8 sps:$4 sm:$0xff]  }
  0x8b   :  { %1322 = vmatprep.subr.bf16.mxu0 %v1649_v35 }
  0x8e   :  { %1323 = vmatpush3.bf16.msra.mxu0 %v1427_v62  ;;  %v1456_v62 = vld [vmem:[%s2132_s11 + $0x30] ss:$8 sps:$4 sm:$0xff]  }
  0x8f   :  { %1324 = vmatprep.subr.bf16.mxu0 %v1649_v35 }
  0x92   :  { %1325 = vmatpush3.bf16.msra.mxu0 %v1428_v63  ;;  %v1461_v63 = vld [vmem:[%s2132_s11 + $0x44] ss:$8 sps:$4 sm:$0xff]  }
  0x93   :  { %1326 = vmatprep.subr.bf16.mxu0 %v1649_v35 }
  0x96   :  { %1327 = vmatpush3.bf16.msra.mxu0 %v1429_v1  ;;  %v1459_v1 = vld [vmem:[%s2132_s11 + $0x40] ss:$8 sps:$4 sm:$0xff]  }
  0x97   :  { %1328 = vmatprep.subr.bf16.mxu0 %v1649_v35 }
  0x9a   :  { %1329 = vmatpush3.bf16.msra.mxu0 %v1430_v2  ;;  %v1464_v2 = vld [vmem:[%s2132_s11 + $0x54] ss:$8 sps:$4 sm:$0xff]  }
  0x9b   :  { %1354 = vmatprep.subr.bf16.mxu0 %v1649_v35 }
 0x150   :  { %v253_v44 = vpop.f32.mrb[0].mxu0 }
 0x151   :  { %v254_v45 = vadd.f32 %v253_v44, %v132_v42  ;;  %v255_v46 = vpop.f32.mrb[1].mxu0  ;;  %v1443_v42 = vld [vmem:[%s2130_s9 + $0x20] sm:$0xff]   ;;  %v1446_v44 = vld [vmem:[%s2130_s9 + $0x38] sm:$0xff]  }
 0x152   :  { %v256_v47 = vadd.f32 %v255_v46, %v136_v43  ;;  %v257_v48 = vpop.f32.mrb[2].mxu0  ;;  %v1444_v43 = vld [vmem:[%s2130_s9 + $0x28] sm:$0xff]  }
 0x153   :  { %v260_v49 = vmul.f32 0.5, %v254_v45  ;;  %v258_v50 = vpop.f32.mrb[3].mxu0  ;;  %v1447_v45 = vld [vmem:[%s2132_s11] ss:$8 sps:$4 sm:$0xff]   ;;  %v1449_v46 = vld [vmem:[%s2132_s11 + $0x4] ss:$8 sps:$4 sm:$0xff]  }
 0x154   :  { %v261_v51 = vmul.f32 0.5, %v256_v47  ;;  %v1452_v47 = vld [vmem:[%s2132_s11 + $0x14] ss:$8 sps:$4 sm:$0xff]   ;;  %v1455_v48 = vld [vmem:[%s2132_s11 + $0x24] ss:$8 sps:$4 sm:$0xff]  }
 0x155   :  { %1487 = vtanh.f32 %v260_v49  ;;  %v1453_v49 = vld [vmem:[%s2132_s11 + $0x20] ss:$8 sps:$4 sm:$0xff]   ;;  %v1192_v50 = vld [vmem:[#allocation8] ss:$0 sm:$0xff] }
 0x156   :  { %1489 = vtanh.f32 %v261_v51 }
 0x15f   :  { %v1488_v52 = vpop.eup %1487 }
 0x160   :  { %v1490_v53 = vpop.eup %1489  ;;  %v264_v54 = vadd.f32 1.0, %v1488_v52 }
 0x161   :  { %v265_v55 = vadd.f32 1.0, %v1490_v53 }
 0x162   :  { %v266_v56 = vmul.f32 0.5, %v264_v54 }
 0x163   :  { %v267_v57 = vmul.f32 0.5, %v265_v55 }
 0x164   :  { %v268_v59 = vpack.c.bf16 %v266_v56, %v266_v56 }
 0x165   :  { %v269_v58 = vpack.c.bf16 %v267_v57, %v267_v57 }
 0x167   :  { %437 = vmatprep.mubr.bf16.mxu1 %v269_v58 }
 0x168   :  { %438 = vmatmul.mubr.bf16.vlgmr.msra.gmra.mrb[0].mxu1 %v268_v59 }
 0x169   :  { %1350 = vmatprep.mubr.msk.bf16.mxu1 %vm1650_vm0, %v1649_v35  ;;  %1335 = vmatpush3.bf16.msra.mxu1 %v1431_v3  ;;  %v1462_v3 = vld [vmem:[%s2132_s11 + $0x50] ss:$8 sps:$4 sm:$0xff]  }
 0x16a   :  { %1336 = vmatprep.subr.bf16.mxu1 %v1649_v35 }
 0x16d   :  { %1337 = vmatpush3.bf16.msra.mxu1 %v1432_v4  ;;  %v1467_v4 = vld [vmem:[%s2132_s11 + $0x64] ss:$8 sps:$4 sm:$0xff]  }
 0x16e   :  { %1338 = vmatprep.subr.bf16.mxu1 %v1649_v35 }
 0x171   :  { %1339 = vmatpush3.bf16.msra.mxu1 %v1433_v5  ;;  %v1465_v5 = vld [vmem:[%s2132_s11 + $0x60] ss:$8 sps:$4 sm:$0xff]  }
 0x172   :  { %1340 = vmatprep.subr.bf16.mxu1 %v1649_v35 }
 0x175   :  { %1341 = vmatpush3.bf16.msra.mxu1 %v1434_v18 }
 0x176   :  { %1342 = vmatprep.subr.bf16.mxu1 %v1649_v35 }
 0x179   :  { %1343 = vmatpush3.bf16.msra.mxu1 %v1435_v19 }
 0x17a   :  { %1344 = vmatprep.subr.bf16.mxu1 %v1649_v35 }
 0x17d   :  { %1345 = vmatpush3.bf16.msra.mxu1 %v1436_v20 }
 0x17e   :  { %1346 = vmatprep.subr.bf16.mxu1 %v1649_v35 }
 0x181   :  { %1347 = vmatpush3.bf16.msra.mxu1 %v1437_v21 }
 0x182   :  { %1348 = vmatprep.subr.bf16.mxu1 %v1649_v35 }
 0x185   :  { %1349 = vmatpush3.bf16.msra.mxu1 %v1438_v22 }
 0x186   :  { %906 = vmatprep.subr.bf16.mxu1 %v1449_v46 }
 0x23b   :  { %v1259_v6 = vpop.f32.mrb[0].mxu1 }
 0x23c   :  { %v1260_v8 = vpop.f32.mrb[1].mxu1 }
 0x23d   :  { %v1261_v9 = vadd.f32 %v1260_v8, %v1259_v6  ;;  %v1262_v10 = vpop.f32.mrb[2].mxu1  ;;  %v1470_v6 = vld [vmem:[%s2132_s11 + $0x74] ss:$8 sps:$4 sm:$0xff]   ;;  %v1471_v8 = vld [vmem:[%s2134_s13 + $0x40] sm:$0xff]  }
 0x23e   :  { %v1263_v11 = vpop.f32.mrb[3].mxu1  ;;  %v1473_v10 = vld [vmem:[%s2134_s13 + $0x48] sm:$0xff]  }
 0x23f   :  { %v440_v12 = vadd.f32 %v1261_v9, %v1166_v7  ;;  %v1468_v7 = vld [vmem:[%s2132_s11 + $0x70] ss:$8 sps:$4 sm:$0xff]   ;;  %v1472_v9 = vld [vmem:[%s2134_s13] sm:$0xff]   ;;  %v1474_v11 = vld [vmem:[%s2134_s13 + $0x8] sm:$0xff]  }
 0x241   :  { %v445_v13 = vmul.f32 0.5, %v440_v12  ;;  %v1201_v12 = vld [vmem:[#allocation10] ss:$0 sm:$0xff] }
 0x243   :  { %1491 = vtanh.f32 %v445_v13 }
 0x24d   :  { %v1492_v14 = vpop.eup %1491 }
 0x24e   :  { %v447_v15 = vadd.f32 1.0, %v1492_v14 }
 0x250   :  { %v448_v16 = vmul.f32 0.5, %v447_v15 }
 0x252   :  { %v449_v17 = vpack.c.bf16 %v448_v16, %v448_v16 }
 0x254   :  { %1331 = vmatmul.mubr.bf16.vlgmr.msra.gmra.mrb[4].mxu0 %v449_v17 }
 0x255   :  { %1370 = vmatprep.mubr.msk.bf16.mxu0 %vm1650_vm0, %v1649_v35  ;;  %1355 = vmatpush3.bf16.msra.mxu0 %v1439_v23  ;;  %v1475_v23 = vld [vmem:[%s2134_s13 + $0x50] sm:$0xff]  }
 0x256   :  { %1356 = vmatprep.subr.bf16.mxu0 %v1649_v35 }
 0x259   :  { %1357 = vmatpush3.bf16.msra.mxu0 %v1440_v24  ;;  %v1476_v24 = vld [vmem:[%s2134_s13 + $0x10] sm:$0xff]  }
 0x25a   :  { %1358 = vmatprep.subr.bf16.mxu0 %v1649_v35 }
 0x25d   :  { %1359 = vmatpush3.bf16.msra.mxu0 %v1441_v25  ;;  %v1477_v25 = vld [vmem:[%s2134_s13 + $0x58] sm:$0xff]  }
 0x25e   :  { %1360 = vmatprep.subr.bf16.mxu0 %v1649_v35 }
 0x261   :  { %1361 = vmatpush3.bf16.msra.mxu0 %v1442_v40 }
 0x262   :  { %1362 = vmatprep.subr.bf16.mxu0 %v1649_v35 }
 0x265   :  { %1363 = vmatpush3.bf16.msra.mxu0 %v1443_v42 }
 0x266   :  { %1364 = vmatprep.subr.bf16.mxu0 %v1649_v35 }
 0x269   :  { %1365 = vmatpush3.bf16.msra.mxu0 %v1444_v43 }
 0x26a   :  { %1366 = vmatprep.subr.bf16.mxu0 %v1649_v35 }
 0x327   :  { %v555_v27 = vpop.f32.mrb[4].mxu0 }
 0x328   :  { %v556_v28 = vadd.f32 %v1183_v26, %v555_v27  ;;  %v1332_v29 = vpop.f32.mrb[5].mxu0  ;;  %v1478_v26 = vld [vmem:[%s2134_s13 + $0x18] sm:$0xff]   ;;  %v1479_v27 = vld [vmem:[%s2134_s13 + $0x60] sm:$0xff]  }
 0x329   :  { %v558_v30 = vpop.f32.mrb[6].mxu0  ;;  %v1481_v29 = vld [vmem:[%s2134_s13 + $0x68] sm:$0xff]  }
 0x32a   :  { %v561_v31 = vmul.f32 0.5, %v556_v28  ;;  %v1333_v32 = vpop.f32.mrb[7].mxu0  ;;  %v1480_v28 = vld [vmem:[%s2134_s13 + $0x20] sm:$0xff]   ;;  %v1482_v30 = vld [vmem:[%s2134_s13 + $0x28] sm:$0xff]  }
 0x32b   :  { %v1484_v32 = vld [vmem:[%s2134_s13 + $0x30] sm:$0xff]  }
 0x32c   :  { %1493 = vtanh.f32 %v561_v31  ;;  %v1483_v31 = vld [vmem:[%s2134_s13 + $0x70] sm:$0xff]  }
 0x336   :  { %v1494_v33 = vpop.eup %1493 }
 0x337   :  { %v563_v34 = vadd.f32 1.0, %v1494_v33  ;;  %v1485_v33 = vld [vmem:[%s2134_s13 + $0x78] sm:$0xff]  }
 0x339   :  { %v564_v36 = vmul.f32 0.5, %v563_v34  ;;  %v1486_v34 = vld [vmem:[%s2134_s13 + $0x38] sm:$0xff]  }
 0x33b   :  { %v565_v37 = vpack.c.bf16 %v564_v36, %v564_v36  ;;  %v814_v36 = vld [vmem:[%s2133_s12] sm:$0x3] }
 0x33c   :  { %v823_v40 = vrot.slane %v814_v36, %v135_v41  ;;  %v1226_v41 = vld [vmem:[%s2135_s14] ss:$0 sm:$0xff] }
 0x33d   :  { %1351 = vmatmul.mubr.bf16.vlgmr.msra.gmra.mrb[4].mxu1 %v565_v37  ;;  %v819_v37 = vrot.slane %v814_v36, %v131_v39 }
 0x33e   :  { %938 = vmatprep.mubr.bf16.mxu1 %v1648_v0  ;;  %v1445_v0 = vld [vmem:[%s2130_s9 + $0x30] sm:$0xff]   ;;  %907 = vmatpush1.bf16.msra.mxu1 %v1447_v45 }
 0x33f   :  { %1367 = vmatpush3.bf16.msra.mxu0 %v1445_v0  ;;  %908 = vmatprep.subr.bf16.mxu1 %v1452_v47 }
 0x340   :  { %1368 = vmatprep.subr.bf16.mxu0 %v1649_v35  ;;  %v1450_v35 = vld [vmem:[%s2132_s11 + $0x10] ss:$8 sps:$4 sm:$0xff]   ;;  %s1139_s11 = sshll.u32 %s1651_s27, 4  ;;  %s1140_s11 = int_to_ptr.vmem [resolvable:$true] %s1139_s11 }
 0x341   :  { %s1613_s28 = scalar_lea.vmem %s1140_s11, 128  ;;  %p1618_p13 = scmp.lt.s32.totalorder %s1140_s11, %s1140_s11 }
 0x342   :  { %909 = vmatpush1.bf16.msra.mxu1 %v1450_v35  ;;  %p1614_p12 = scmp.ne.s32.totalorder %s1140_s11, %s1613_s28  ;;  %p1619_p0 = scmp.lt.s32.totalorder %s1613_s28, %s1613_s28 }
 0x343   :  { %1369 = vmatpush3.bf16.msra.mxu0 %v1446_v44  ;;  %910 = vmatprep.subr.bf16.mxu1 %v1455_v48 }
 0x344   :  { %1292 = vmatprep.subr.bf16.mxu0 %v1471_v8  ;;  %p1620_p1 = por %p1619_p0, %p1618_p13 }
 0x346   :  { %911 = vmatpush1.bf16.msra.mxu1 %v1453_v49  ;;  %p1621_p2 = pnand %p1620_p1, %p1614_p12 }
 0x347   :  { %912 = vmatprep.subr.bf16.mxu1 %v1458_v61 }
 0x34a   :  { %913 = vmatpush1.bf16.msra.mxu1 %v1456_v62 }
 0x34b   :  { %914 = vmatprep.subr.bf16.mxu1 %v1461_v63 }
 0x34e   :  { %915 = vmatpush1.bf16.msra.mxu1 %v1459_v1 }
 0x34f   :  { %916 = vmatprep.subr.bf16.mxu1 %v1464_v2 }
 0x352   :  { %917 = vmatpush1.bf16.msra.mxu1 %v1462_v3 }
 0x353   :  { %918 = vmatprep.subr.bf16.mxu1 %v1467_v4 }
 0x356   :  { %919 = vmatpush1.bf16.msra.mxu1 %v1465_v5 }
 0x357   :  { %920 = vmatprep.subr.bf16.mxu1 %v1470_v6 }
 0x35a   :  { %921 = vmatpush1.bf16.msra.mxu1 %v1468_v7 }
 0x410   :  { %v671_v51 = vpop.f32.mrb[4].mxu1 }
 0x411   :  { %v672_v52 = vadd.f32 %v1192_v50, %v671_v51  ;;  %v1352_v53 = vpop.f32.mrb[5].mxu1 }
 0x412   :  { %v674_v54 = vpop.f32.mrb[6].mxu1 }
 0x413   :  { %v677_v55 = vmul.f32 0.5, %v672_v52  ;;  %v1353_v56 = vpop.f32.mrb[7].mxu1 }
 0x415   :  { %1495 = vtanh.f32 %v677_v55 }
 0x41f   :  { %v1496_v57 = vpop.eup %1495 }
 0x420   :  { %v679_v58 = vadd.f32 1.0, %v1496_v57 }
 0x422   :  { %v680_v59 = vmul.f32 0.5, %v679_v58 }
 0x424   :  { %v681_v60 = vpack.c.bf16 %v680_v59, %v680_v59 }
 0x426   :  { %1371 = vmatmul.mubr.bf16.vlgmr.msra.gmra.mrb[8].mxu0 %v681_v60 }
 0x427   :  { %1293 = vmatpush3.bf16.msra.mxu0 %v1472_v9 }
 0x428   :  { %1294 = vmatprep.subr.bf16.mxu0 %v1473_v10 }
 0x42b   :  { %1295 = vmatpush3.bf16.msra.mxu0 %v1474_v11 }
 0x42c   :  { %1296 = vmatprep.subr.bf16.mxu0 %v1475_v23 }
 0x42f   :  { %1297 = vmatpush3.bf16.msra.mxu0 %v1476_v24 }
 0x430   :  { %1298 = vmatprep.subr.bf16.mxu0 %v1477_v25 }
 0x433   :  { %1299 = vmatpush3.bf16.msra.mxu0 %v1478_v26 }
 0x434   :  { %1300 = vmatprep.subr.bf16.mxu0 %v1479_v27 }
 0x437   :  { %1301 = vmatpush3.bf16.msra.mxu0 %v1480_v28 }
 0x438   :  { %1302 = vmatprep.subr.bf16.mxu0 %v1481_v29 }
 0x43b   :  { %1303 = vmatpush3.bf16.msra.mxu0 %v1482_v30 }
 0x43c   :  { %1304 = vmatprep.subr.bf16.mxu0 %v1483_v31 }
 0x43f   :  { %1305 = vmatpush3.bf16.msra.mxu0 %v1484_v32 }
 0x440   :  { %1306 = vmatprep.subr.bf16.mxu0 %v1485_v33 }
 0x443   :  { %1307 = vmatpush3.bf16.msra.mxu0 %v1486_v34 }
 0x4f9   :  { %v787_v13 = vpop.f32.mrb[8].mxu0 }
 0x4fa   :  { %v788_v14 = vadd.f32 %v1201_v12, %v787_v13  ;;  %v1372_v15 = vpop.f32.mrb[9].mxu0 }
 0x4fb   :  { %v790_v16 = vpop.f32.mrb[10].mxu0 }
 0x4fc   :  { %v793_v17 = vmul.f32 0.5, %v788_v14  ;;  %v1373_v18 = vpop.f32.mrb[11].mxu0 }
 0x4fe   :  { %1497 = vtanh.f32 %v793_v17 }
 0x508   :  { %v1498_v19 = vpop.eup %1497 }
 0x509   :  { %v795_v20 = vadd.f32 1.0, %v1498_v19 }
 0x50b   :  { %v796_v21 = vmul.f32 0.5, %v795_v20 }
 0x50d   :  { %v797_v22 = vpack.c.bf16 %v796_v21, %v796_v21 }
 0x50f   :  { %939 = vmatmul.mubr.bf16.vlgmr.msra.gmra.mrb[8].mxu1 %v797_v22 }
 0x5e2   :  { %v940_v42 = vpop.f32.mrb[8].mxu1 }
 0x5e3   :  { %v941_v43 = vadd.f32 %v940_v42, %v819_v37  ;;  %v942_v0 = vpop.f32.mrb[9].mxu1 }
 0x5e4   :  { %v943_v44 = vadd.f32 %v942_v0, %v823_v40  ;;  %v944_v45 = vpop.f32.mrb[10].mxu1 }
 0x5e5   :  { %v947_v46 = vmul.f32 0.5, %v941_v43  ;;  %v945_v47 = vpop.f32.mrb[11].mxu1 }
 0x5e6   :  { %v948_v35 = vmul.f32 0.5, %v943_v44 }
 0x5e7   :  { %1499 = vtanh.f32 %v947_v46 }
 0x5e8   :  { %1501 = vtanh.f32 %v948_v35 }
 0x5f1   :  { %v1500_v48 = vpop.eup %1499 }
 0x5f2   :  { %v1502_v49 = vpop.eup %1501  ;;  %v951_v50 = vadd.f32 1.0, %v1500_v48 }
 0x5f3   :  { %v952_v51 = vadd.f32 1.0, %v1502_v49 }
 0x5f4   :  { %v953_v52 = vmul.f32 0.5, %v951_v50 }
 0x5f5   :  { %v954_v53 = vmul.f32 0.5, %v952_v51 }
 0x5f6   :  { %v955_v54 = vpack.c.bf16 %v953_v52, %v953_v52 }
 0x5f7   :  { %v956_v39 = vpack.c.bf16 %v954_v53, %v954_v53 }
 0x5f9   :  { %1124 = vmatprep.mubr.bf16.mxu0 %v956_v39 }
 0x5fa   :  { %1125 = vmatmul.mubr.bf16.vlgmr.msra.gmra.mrb[12].mxu0 %v955_v54 }
 0x6cd   :  { %v1308_v38 = vpop.f32.mrb[12].mxu0 }
 0x6ce   :  { %v1309_v55 = vpop.f32.mrb[13].mxu0 }
 0x6cf   :  { %v1310_v56 = vadd.f32 %v1309_v55, %v1308_v38  ;;  %v1311_v57 = vpop.f32.mrb[14].mxu0 }
 0x6d0   :  { %v1312_v58 = vpop.f32.mrb[15].mxu0 }
 0x6d1   :  { %v1127_v59 = vadd.f32 %v1310_v56, %v1226_v41 }
 0x6d3   :  { %1132 = vst [vmem:[#allocation11] sm:$0xff] %v1127_v59 }
 0x6d4   :  { %1624 = shalt.err (!%p1621_p2)
}
 0x6d5   :  { %s1625_s14 = scalar_lea.hbm %s2136_s15, 128 }
 0x6d6   :  { %p1626_p3 = scmp.ne.s32.totalorder %s2136_s15, %s1625_s14  ;;  %p1629_p4 = scmp.lt.u32.totalorder %s1625_s14, %s2136_s15 }
 0x6d8   :  { %p1631_p5 = pnand %p1629_p4, %p1626_p3 }
 0x6da   :  { %1634 = shalt.err (!%p1631_p5)
}
 0x6db   :  { %1142 = dma.vmem_to_hbm [thread:$0]  %s1140_s11, 128, %s2136_s15, [#allocation4]  }
 0x6dc   :  { %1641 = dma.done.wait [#allocation4], 128  }
 0x6dd   :  { %1642 = vsyncadd [#allocation4], 4294967168 }
 0x6de   :  { %1146 = vsyncpa [#allocation3], 1 }
 0x6df   :  { %1147 = vsyncpa [#allocation6], 1 }
 0x6e0   :  { %1148 = vsyncpa [#allocation9], 1 }
 0x6e1   :  { %1149 = vsyncpa [#allocation4], 1 }

</bundles_post_ra>
